<compile_context>
chip_gen: v7x
topology: tpu7x:2x2x1
jax: 0.10.0
libtpu: 0.0.40
codegen_flags: <defaults>
</compile_context>

<pallas_src>
import functools
import math

import jax
import jax.numpy as jnp
from jax.experimental import pallas as pl
from jax.experimental.pallas import tpu as pltpu


# ----------------------------- kernel helpers ------------------------------ #

def _layer_norm(y, gamma, beta, eps=1e-5):
    mu = jnp.mean(y, axis=-1, keepdims=True)
    var = jnp.mean((y - mu) ** 2, axis=-1, keepdims=True)
    return (y - mu) * jax.lax.rsqrt(var + eps) * gamma + beta


def _gelu_exact(y):
    # torch.nn.GELU() default = exact erf formulation
    return 0.5 * y * (1.0 + jax.lax.erf(y * (1.0 / math.sqrt(2.0))))


def _vmem_limit_bytes(estimate_bytes):
    """Explicit scoped-VMEM limit: estimate + headroom, clamped to chip capacity."""
    try:
        cap = pltpu.get_tpu_info().vmem_capacity_bytes
    except Exception:  # query unavailable -> assume the smallest (v7x) VMEM
        cap = 64 * 1024 * 1024
    limit = int(estimate_bytes * 1.25) + (4 << 20)   # ~20-25% headroom
    limit = max(limit, 32 << 20)                     # never below default scoped limit
    return min(limit, int(cap * 0.9))


# ------------------------- K/V projection pre-pass -------------------------- #

def _kv_proj_kernel(x_ref, wkv_ref, o_ref):
    o_ref[0] = jnp.dot(
        x_ref[0], wkv_ref[...], preferred_element_type=jnp.float32
    ).astype(o_ref.dtype)


def kv_project(x_bf16, wkv, s_tile=256):
    """kv = x @ [Wk | Wv], hoisted out of the per-query-tile loop (bf16 output)."""
    N, S, D = x_bf16.shape
    TS = min(s_tile, S)
    assert S % TS == 0, "seq_len must be a multiple of the sequence tile"
    est = ((TS * D + D * 2 * D + TS * 2 * D) * 2) * 2 + TS * 2 * D * 4 * 2
    return pl.pallas_call(
        _kv_proj_kernel,
        out_shape=jax.ShapeDtypeStruct((N, S, 2 * D), jnp.bfloat16),
        grid_spec=pltpu.PrefetchScalarGridSpec(
            num_scalar_prefetch=0,
            grid=(N, S // TS),
            in_specs=[
                pl.BlockSpec((1, TS, D), lambda n, s: (n, s, 0)),
                pl.BlockSpec((D, 2 * D), lambda n, s: (0, 0)),
            ],
            out_specs=pl.BlockSpec((1, TS, 2 * D), lambda n, s: (n, s, 0)),
        ),
        compiler_params=pltpu.CompilerParams(
            dimension_semantics=("parallel", "parallel"),
            vmem_limit_bytes=_vmem_limit_bytes(est)),
    )(x_bf16, wkv)


# --------------------------- encoder block kernel --------------------------- #

def _encoder_block_kernel(
    x_ref, kv_ref, mask_ref,
    wq_ref, wo_ref, bo_ref,
    g1_ref, be1_ref,
    w1_ref, b1_ref, w2_ref, b2_ref,
    g2_ref, be2_ref,
    o_ref,
    *, heads: int,
):
    x_q = x_ref[0]                     # (TQ, D) bf16 query tile / residual input
    kv = kv_ref[0]                     # (S, 2D) bf16 precomputed K|V, full sequence
    keep = mask_ref[0] != 0            # (TQ, S) bool (int8 mask tile, 0 = masked)
    TQ, D = x_q.shape
    S = kv.shape[0]
    d_k = D // heads

    x_q_f32 = x_q.astype(jnp.float32)

    # ---- query projection (1/sqrt(d_k) already folded into wq) ----
    q = jnp.dot(x_q, wq_ref[...], preferred_element_type=jnp.float32)        # (TQ, D)

    # K/V arrive in bf16; relayout to head-major in f32, cast to bf16 at the MXU.
    k = kv[:, :D].astype(jnp.float32)
    v = kv[:, D:].astype(jnp.float32)

    q3 = q.reshape(TQ, heads, d_k).transpose(1, 0, 2).astype(jnp.bfloat16)   # (H, TQ, d_k)
    k3 = k.reshape(S, heads, d_k).transpose(1, 0, 2).astype(jnp.bfloat16)    # (H, S, d_k)
    v3 = v.reshape(S, heads, d_k).transpose(1, 0, 2).astype(jnp.bfloat16)    # (H, S, d_k)

    scores = jnp.einsum('hqd,hkd->hqk', q3, k3,
                        preferred_element_type=jnp.float32)                  # (H, TQ, S)
    # torch: masked_fill(mask == 0, -1e10) then softmax(scores / sqrt(d_k)).
    # The sqrt(d_k) scale is baked into wq; it only rescales the -1e10 sentinel,
    # which leaves the softmax result unchanged (fully-masked rows stay uniform).
    scores = jnp.where(keep[None, :, :], scores, jnp.float32(-1e10))
    scores = scores - jnp.max(scores, axis=-1, keepdims=True)
    p = jnp.exp(scores)
    inv_denom = pl.reciprocal(jnp.sum(p, axis=-1, keepdims=True), approx=True)
    attn = p * inv_denom

    ctx = jnp.einsum('hqk,hkd->hqd', attn.astype(jnp.bfloat16), v3,
                     preferred_element_type=jnp.float32)                     # (H, TQ, d_k)
    attn_out = ctx.transpose(1, 0, 2).reshape(TQ, D)                         # (TQ, D)

    sub1 = jnp.dot(attn_out.astype(jnp.bfloat16), wo_ref[...],
                   preferred_element_type=jnp.float32) + bo_ref[...]         # (TQ, D)

    # ---- residual + LayerNorm 1 (dropout = identity, eval mode) ----
    h1 = _layer_norm(x_q_f32 + sub1, g1_ref[...], be1_ref[...])

    # ---- feed forward ----
    ff = jnp.dot(h1.astype(jnp.bfloat16), w1_ref[...],
                 preferred_element_type=jnp.float32) + b1_ref[...]
    ff = _gelu_exact(ff)
    ff = jnp.dot(ff.astype(jnp.bfloat16), w2_ref[...],
                 preferred_element_type=jnp.float32) + b2_ref[...]

    # ---- residual + LayerNorm 2 ----
    out = _layer_norm(h1 + ff, g2_ref[...], be2_ref[...])

    o_ref[0] = out.astype(o_ref.dtype)


def _encoder_block_vmem_estimate(S, D, F, TQ, heads):
    bf = 2  # bf16 bytes
    blocks = (TQ * D * bf              # x query tile
              + S * 2 * D * bf         # precomputed K|V (full sequence)
              + TQ * S                 # int8 mask tile
              + 2 * D * D * bf         # wq, wo
              + (D * F + F * D) * bf   # w1, w2
              + (6 * D + F) * 4        # biases + LN params (f32)
              + TQ * D * bf)           # output tile
    blocks *= 2                        # pipeline double-buffering
    interm = (3 * heads * TQ * S * 4   # scores / probs / attn (f32)
              + 4 * S * D * 4          # k/v relayout temporaries
              + 8 * TQ * D * 4         # q / ctx / attn_out / h1 / residuals
              + 2 * TQ * F * 4)        # FFN intermediate
    return blocks + interm


def encoder_block(x_bf16, kv_bf16, mask_i8, p, heads, q_tile=256):
    """One Encoder_Block. x: (N,S,D) bf16, kv: (N,S,2D) bf16, mask_i8: (N,S,S)."""
    N, S, D = x_bf16.shape
    F = p["w1"].shape[1]
    TQ = min(q_tile, S)
    assert S % TQ == 0, "seq_len must be a multiple of the query tile"

    # Constant index maps: weight DMAs are not re-issued across query-tile steps.
    const = lambda shape: pl.BlockSpec(shape, lambda n, j: (0,) * len(shape))
    in_specs = [
        pl.BlockSpec((1, TQ, D), lambda n, j: (n, j, 0)),       # x query tile
        pl.BlockSpec((1, S, 2 * D), lambda n, j: (n, 0, 0)),    # precomputed K|V
        pl.BlockSpec((1, TQ, S), lambda n, j: (n, j, 0)),       # int8 mask tile
        const((D, D)),                                          # wq (pre-scaled)
        const((D, D)), const((1, D)),                           # wo, bo
        const((1, D)), const((1, D)),                           # ln1 gamma, beta
        const((D, F)), const((1, F)),                           # ffn w1, b1
        const((F, D)), const((1, D)),                           # ffn w2, b2
        const((1, D)), const((1, D)),                           # ln2 gamma, beta
    ]

    kernel = functools.partial(_encoder_block_kernel, heads=heads)
    est = _encoder_block_vmem_estimate(S, D, F, TQ, heads)
    return pl.pallas_call(
        kernel,
        out_shape=jax.ShapeDtypeStruct((N, S, D), jnp.bfloat16),
        grid_spec=pltpu.PrefetchScalarGridSpec(
            num_scalar_prefetch=0,
            grid=(N, S // TQ),
            in_specs=in_specs,
            out_specs=pl.BlockSpec((1, TQ, D), lambda n, j: (n, j, 0)),
        ),
        compiler_params=pltpu.CompilerParams(
            dimension_semantics=("parallel", "parallel"),
            vmem_limit_bytes=_vmem_limit_bytes(est)),
    )(
        x_bf16, kv_bf16, mask_i8,
        p["wq"], p["wo"], p["bo"],
        p["g1"], p["be1"],
        p["w1"], p["b1"], p["w2"], p["b2"],
        p["g2"], p["be2"],
    )


# ------------------------ embedding (plain JAX glue) ------------------------ #
# TODO(synk): the referenced `Embedding.one_hot_and_pos` class is not provided in
# the source; approximated as one_hot(token, d_model) + sinusoidal positional enc.

def one_hot_and_pos(enc_input, d_model):
    N, S = enc_input.shape
    oh = jax.nn.one_hot(enc_input, d_model, dtype=jnp.float32)       # (N, S, D)
    pos = jnp.arange(S, dtype=jnp.float32)[:, None]
    i = jnp.arange(d_model, dtype=jnp.float32)[None, :]
    angle = pos / jnp.power(10000.0, (2.0 * jnp.floor(i / 2.0)) / d_model)
    pe = jnp.where(jnp.arange(d_model)[None, :] % 2 == 0,
                   jnp.sin(angle), jnp.cos(angle))                   # (S, D)
    return oh + pe[None, :, :]


def encoder_forward(enc_input, mask, layer_params, d_model, heads, q_tile=256):
    # dropout = identity (eval). Residual stream carried in bf16 between layers.
    out = one_hot_and_pos(enc_input, d_model).astype(jnp.bfloat16)
    # Compact int8 mask (N, S, S): 4x less DMA than f32, converted once per call.
    # (Assumes the (N,1,S,S) mask is head-broadcast, as in the torch driver.)
    mask_i8 = (mask[:, 0] != 0).astype(jnp.int8)
    for p in layer_params:
        kv = kv_project(out, p["wkv"], s_tile=q_tile)   # hoisted K/V projection
        out = encoder_block(out, kv, mask_i8, p, heads, q_tile=q_tile)
    return out.astype(jnp.float32)


# ---------------------------- param init ------------------------------------ #

def _uniform(key, shape, fan_in):
    bound = 1.0 / math.sqrt(fan_in)
    return jax.random.uniform(key, shape, jnp.float32, -bound, bound)


def init_block_params(key, d_model, heads, ff_expansion):
    F = ff_expansion * d_model
    d_k = d_model // heads
    ks = jax.random.split(key, 8)
    wq = _uniform(ks[0], (d_model, d_model), d_model)
    wk = _uniform(ks[1], (d_model, d_model), d_model)
    wv = _uniform(ks[2], (d_model, d_model), d_model)
    return {
        # matmul weights stored (in, out), bf16 for the MXU.
        # wq is pre-scaled by 1/sqrt(d_k): softmax((QK^T)/sqrt(d_k)) ==
        # softmax((Q/sqrt(d_k))K^T), removing a full (H,TQ,S) scaling pass per step.
        "wq": (wq * (1.0 / math.sqrt(d_k))).astype(jnp.bfloat16),
        "wkv": jnp.concatenate([wk, wv], axis=1).astype(jnp.bfloat16),
        "wo": _uniform(ks[3], (d_model, d_model), d_model).astype(jnp.bfloat16),
        "bo": _uniform(ks[4], (1, d_model), d_model),
        "g1": jnp.ones((1, d_model), jnp.float32),
        "be1": jnp.zeros((1, d_model), jnp.float32),
        "w1": _uniform(ks[5], (d_model, F), d_model).astype(jnp.bfloat16),
        "b1": _uniform(ks[6], (1, F), d_model),
        "w2": _uniform(ks[7], (F, d_model), F).astype(jnp.bfloat16),
        "b2": jnp.zeros((1, d_model), jnp.float32),
        "g2": jnp.ones((1, d_model), jnp.float32),
        "be2": jnp.zeros((1, d_model), jnp.float32),
    }


# -------------------------------- main --------------------------------------- #

if __name__ == "__main__":
    d_model, heads, ff_expansion, num_layer, seq_len = 32, 4, 4, 2, 8
    batch = 2

    key = jax.random.PRNGKey(0)
    k_tok, k_params = jax.random.split(key)

    enc_input = jax.random.randint(k_tok, (batch, seq_len), 0, d_model)   # token ids
    mask = jnp.ones((batch, 1, seq_len, seq_len), jnp.float32)            # 1 = keep

    layer_params = [
        init_block_params(k, d_model, heads, ff_expansion)
        for k in jax.random.split(k_params, num_layer)
    ]

    out = encoder_forward(enc_input, mask, layer_params, d_model, heads)
    jax.block_until_ready(out)
    assert out.shape == (batch, seq_len, d_model)
    print("KERNEL_OK")
</pallas_src>

<mosaic_0001>
module attributes {stable_mosaic.version = 11 : i64} {
  func.func @_kv_proj_kernel(%arg0: i32, %arg1: i32, %arg2: memref<1x8x32xbf16, #tpu.memory_space<vmem>>, %arg3: memref<32x64xbf16, #tpu.memory_space<vmem>>, %arg4: memref<1x8x64xbf16, #tpu.memory_space<vmem>>) attributes {dimension_semantics = [#tpu.dimension_semantics<parallel>, #tpu.dimension_semantics<parallel>], iteration_bounds = array<i64: 2, 1>, scalar_prefetch = 0 : i64, scratch_operands = 0 : i64, tpu.core_type = #tpu.core_type<tc>, window_params = [{transform_indices = @transform_0, window_bounds = array<i64: 1, 8, 32>}, {pipeline_mode = #tpu.pipeline_mode<synchronous>, transform_indices = @transform_1, window_bounds = array<i64: 32, 64>}, {transform_indices = @transform_2, window_bounds = array<i64: 1, 8, 64>}]} {
    %c0 = arith.constant 0 : index
    %c0_0 = arith.constant 0 : index
    %c0_1 = arith.constant 0 : index
    %0 = vector.load %arg2[%c0, %c0_0, %c0_1] : memref<1x8x32xbf16, #tpu.memory_space<vmem>>, vector<1x8x32xbf16>
    %1 = vector.shape_cast %0 : vector<1x8x32xbf16> to vector<8x32xbf16>
    %c0_2 = arith.constant 0 : index
    %c0_3 = arith.constant 0 : index
    %2 = vector.load %arg3[%c0_2, %c0_3] : memref<32x64xbf16, #tpu.memory_space<vmem>>, vector<32x64xbf16>
    %cst = arith.constant dense<0.000000e+00> : vector<8x64xf32>
    %3 = tpu.matmul %1, %2, %cst {dimension_numbers = #tpu.dot_dimension_numbers<[1], [0], [0], [1], [0, 0, 1, 1], [], []>} : vector<8x32xbf16>, vector<32x64xbf16>, vector<8x64xf32> -> vector<8x64xf32>
    %4 = arith.truncf %3 : vector<8x64xf32> to vector<8x64xbf16>
    %c0_4 = arith.constant 0 : index
    %c0_5 = arith.constant 0 : index
    %c0_6 = arith.constant 0 : index
    %5 = vector.load %arg4[%c0_4, %c0_5, %c0_6] : memref<1x8x64xbf16, #tpu.memory_space<vmem>>, vector<1x8x64xbf16>
    %6 = vector.shape_cast %5 : vector<1x8x64xbf16> to vector<8x64xbf16>
    %7 = vector.shape_cast %4 : vector<8x64xbf16> to vector<1x8x64xbf16>
    tpu.vector_store %arg4[%c0_4, %c0_5, %c0_6], %7 {strides = array<i32>} : memref<1x8x64xbf16, #tpu.memory_space<vmem>>, vector<1x8x64xbf16>,
    return
  }
  func.func @transform_0(%arg0: i32, %arg1: i32) -> (i32, i32, i32) {
    %c0_i32 = arith.constant 0 : i32
    %c0_i32_0 = arith.constant 0 : i32
    return %arg0, %arg1, %c0_i32 : i32, i32, i32
  }
  func.func @transform_1(%arg0: i32, %arg1: i32) -> (i32, i32) {
    %c0_i32 = arith.constant 0 : i32
    %c0_i32_0 = arith.constant 0 : i32
    %c0_i32_1 = arith.constant 0 : i32
    return %c0_i32, %c0_i32_0 : i32, i32
  }
  func.func @transform_2(%arg0: i32, %arg1: i32) -> (i32, i32, i32) {
    %c0_i32 = arith.constant 0 : i32
    %c0_i32_0 = arith.constant 0 : i32
    return %arg0, %arg1, %c0_i32 : i32, i32, i32
  }
}

</mosaic_0001>

<bundles_post_ra>
// kernel: tpu_custom_call.1
= control target key start
LH: loop header
LB: loop body
LE: loop exit
PB: predicated region body
PF: predicated region fallthrough
CT: control target
= control target key end

     0   :  { %7 = vsyncpa [#allocation3], 0  ;;  %s851_s0 = inlined_call_operand.hbm [shape: bf16[2,8,32], index: 0, kind: input, shape index: {}]   ;;  %s852_s1 = inlined_call_operand.hbm [shape: bf16[32,64], index: 1, kind: input, shape index: {}]   ;;  %s853_s2 = inlined_call_operand.hbm [shape: bf16[2,8,64], index: 2, kind: output, shape index: {}]  }
   0x1   :  { %9 = vsyncpa [#allocation3 + $0x1], 0 }
   0x2   :  { %10 = vsyncpa [#allocation6], 0 }
   0x3   :  { %11 = vsyncpa [#allocation4], 0 }
   0x4   :  { %13 = vsyncpa [#allocation4 + $0x1], 0  ;;  %s637_s9 = smov 0   ;;  %s639_s10 = smov 0  }
   0x5   :  { %s641_s11 = smov 0   ;;  %s643_s12 = smov 0  }
   0x6   :  { %s645_s13 = smov 0   ;;  %s647_s14 = smov 0  }
   0x7 LB: > { %s361_s15 = sadd.s32 4294967295, %s613_s14   ;;  %s362_s16 = sadd.s32 4294967294, %s613_s14   ;;  %s613_s14 = sphi %s647_s14, %s19_s14   ;;  %s609_s13 = sphi %s645_s13, %s877_s13   ;;  %s605_s12 = sphi %s643_s12, %s876_s12   ;;  %s601_s11 = sphi %s641_s11, %s875_s11   ;;  %s597_s10 = sphi %s639_s10, %s874_s10   ;;  %s593_s9 = sphi %s637_s9, %s873_s9  }
   0x8   : > { %p53_p0 = scmp.ne.s32.totalorder %s597_s10, %s593_s9  ;;  %p671_p1 = scmp.eq.s32.totalorder %s361_s15, 0 }
   0x9   : > { %p675_p2 = scmp.eq.s32.totalorder %s361_s15, 1  ;;  %p106_p3 = scmp.eq.s32.totalorder %s362_s16, 1 }
   0xa   : > { %s858_s17 = scalar_select %p671_p1, 1, 0 }
   0xb   : > { %s859_s18 = scalar_select %p675_p2, 1, 0 }
   0xc   : > { %p681_p4 = por %p671_p1, %p53_p0  ;;  %p363_p5 = scmp.ge.s32.totalorder %s613_s14, 1 }
   0xd   : > { %p686_p6 = por %p106_p3, %p53_p0  ;;  %p113_p7 = scmp.lt.s32.totalorder %s613_s14, 3 }
   0xe   : > { %s860_s19 = scalar_select %p681_p4, 1, 0 }
   0xf   : > { %s861_s20 = scalar_select %p686_p6, 1, 0 }
  0x10   : > { %p691_p8 = pnand %p363_p5, %p113_p7  ;;  %s615_s22 = smov [#allocation5]  }
  0x11   : > { %s125_s23 = sshll.u32 %s615_s22, 4  ;;  %s31_s25 = sadd.s32 1, %s609_s13  ;;  %s126_s23 = int_to_ptr.vmem [resolvable:$true] %s125_s23 }
  0x12   : > { %s862_s21 = scalar_select %p691_p8, 1, 0 }
  0x13   : > { %p398_p9 = pneg %p691_p8  ;;  %s469_s28 = scalar_lea.hbm %s852_s1, 256 }
  0x14   : > { %p470_p12 = scmp.ne.s32.totalorder %s852_s1, %s469_s28  ;;  %p476_p5 = scmp.lt.u32.totalorder %s469_s28, %s852_s1 }
  0x15   : > { %p700_p11 = pnand %p398_p9, %p671_p1 }
  0x17   : > { %p471_p13 = pneg %p700_p11 }
  0x19   : > { %p472_p0 = pnand %p471_p13, %p470_p12 }
  0x1b   : > { %p473_p3 = pneg %p472_p0 }
  0x1d   : > { %p478_p7 = pnand %p476_p5, %p473_p3 }
  0x1f   : > { %481 = shalt.err (!%p478_p7)
}
  0x20   : > { %s482_s5 = scalar_lea.vmem %s126_s23, 256  ;;  %p490_p1 = scmp.lt.s32.totalorder %s126_s23, %s126_s23 }
  0x21   : > { %p483_p9 = scmp.ne.s32.totalorder %s126_s23, %s482_s5  ;;  %p491_p4 = scmp.lt.s32.totalorder %s482_s5, %s482_s5 }
  0x23   : > { %p485_p10 = pnand %p483_p9, %p471_p13  ;;  %p492_p8 = por %p491_p4, %p490_p1 }
  0x25   : > { %p486_p6 = pneg %p485_p10 }
  0x27   : > { %p493_p2 = pnand %p492_p8, %p486_p6 }
  0x29   : > { %496 = shalt.err (!%p493_p2)
}
  0x2a   : > { %s616_s6 = smov 64   ;;  %s617_s7 = smov 4  }
  0x2b   : > { %401 = dma.hbm_to_vmem [thread:$0]  (!%p700_p11), %s852_s1, 256, %s126_s23, [#allocation6], %s616_s6, %s616_s6, %s617_s7  }
  0x2c   : > { %p33_p1 = scmp.ge.s32.totalorder %s31_s25, 2  ;;  %s40_s16 = sadd.s32 1, %s601_s11 }
  0x2d   : > { %p47_p2 = scmp.ne.s32.totalorder %s601_s11, %s597_s10  ;;  %p48_p4 = scmp.eq.s32.totalorder %s613_s14, 0 }
  0x2e   : > { %s879_s25 = smov (%p33_p1, %s31_s25), 0  ;;  %p865_p8 = scmp.ne.s32.totalorder %s859_s18, 0 }
  0x2f   : > { %p727_p6 = por %p48_p4, %p47_p2  ;;  %s35_s24 = ssub.s32 %s609_s13, %s879_s25 }
  0x30   : > { %p733_p10 = por %p865_p8, %p47_p2  ;;  %p411_p12 = scmp.lt.s32.totalorder %s613_s14, 2 }
  0x31   : > { %p38_p11 = scmp.eq.s32.totalorder %s35_s24, 0  ;;  %s139_s23 = sand.u32 1, %s601_s11  }
  0x32   : > { %s366_s27 = sshll.u32 %s139_s23, 2  ;;  %s367_s29 = sshll.u32 %s609_s13, 6 }
  0x33   : > { %s742_s28 = scalar_select %p38_p11, %s601_s11, %s40_s16  }
  0x34   : > { %s748_s4 = scalar_lea.hbm %s851_s0, %s367_s29  ;;  %s143_s18 = scalar_lea.vmem [#allocation2], %s366_s27 }
  0x35   : > { %s151_s5 = sshll.u32 %s143_s18, 4  ;;  %p754_p13 = pnand %p411_p12, %p727_p6  ;;  %s750_s5 = int_to_ptr.vmem [resolvable:$true] %s151_s5 }
  0x36   : > { %s140_s7 = scalar_lea.sflag [#allocation3], %s139_s23  ;;  %s497_s8 = scalar_lea.hbm %s748_s4, 64 }
  0x37   : > { %p498_p0 = scmp.ne.s32.totalorder %s748_s4, %s497_s8  ;;  %p499_p3 = pneg %p754_p13 }
  0x38   : > { %s502_s24 = scalar_lea.hbm %s851_s0, 128  ;;  %p503_p9 = scmp.lt.u32.totalorder %s748_s4, %s851_s0 }
  0x39   : > { %p500_p5 = pnand %p499_p3, %p498_p0  ;;  %p504_p1 = scmp.lt.u32.totalorder %s502_s24, %s497_s8 }
  0x3a   : > { %p506_p4 = scmp.lt.u32.totalorder %s497_s8, %s748_s4 }
  0x3b   : > { %p501_p7 = pneg %p500_p5  ;;  %p505_p2 = por %p504_p1, %p503_p9 }
  0x3d   : > { %p507_p6 = por %p506_p4, %p505_p2 }
  0x3f   : > { %p508_p8 = pnand %p507_p6, %p501_p7 }
  0x41   : > { %511 = shalt.err (!%p508_p8)
}
  0x42   : > { %s512_s23 = scalar_lea.vmem %s750_s5, 64  ;;  %s618_s29 = smov [#allocation2]  }
  0x43   : > { %p513_p12 = scmp.ne.s32.totalorder %s750_s5, %s512_s23  ;;  %s517_s30 = sshll.u32 %s618_s29, 4  ;;  %s518_s30 = int_to_ptr.vmem [resolvable:$false] %s517_s30 }
  0x44   : > { %s519_s3 = scalar_lea.vmem %s518_s30, 128  ;;  %p520_p5 = scmp.lt.s32.totalorder %s750_s5, %s518_s30 }
  0x45   : > { %p515_p11 = pnand %p513_p12, %p499_p3  ;;  %p521_p9 = scmp.lt.s32.totalorder %s519_s3, %s512_s23 }
  0x47   : > { %p516_p0 = pneg %p515_p11  ;;  %p522_p1 = por %p521_p9, %p520_p5 }
  0x49   : > { %p523_p2 = pnand %p522_p1, %p516_p0 }
  0x4b   : > { %526 = shalt.err (!%p523_p2)
}
  0x4c   : > { %405 = dma.hbm_to_vmem [thread:$0]  (!%p754_p13), %s748_s4, 64, %s750_s5, %s140_s7  }
  0x4d   : > { %p868_p7 = scmp.ne.s32.totalorder %s862_s21, 0 }
  0x4e   : > { %s786_s18 = sand.u32 (!%p868_p7), 1, %s597_s10   ;;  %p869_p3 = scmp.ne.s32.totalorder (!%p868_p7), %s860_s19, 0 }
  0x4f   : > { %160 = sbr.rel (%p868_p7) target bundleno = 327 (0x147), region = 28  ;;  %s369_s8 = sshll.u32 (!%p868_p7), %s786_s18, 2 }
  0x50   : > { %s163_s15 = scalar_lea.sflag (!%p868_p7), [#allocation3], %s786_s18  ;;  %s166_s16 = scalar_lea.vmem (!%p868_p7), [#allocation2], %s369_s8 }
  0x56   : > { %580 = dma.done.wait (%p869_p3), %s163_s15, 64  }
  0x57   : > { %582 = vsyncadd (%p869_p3), %s163_s15, 4294967232  ;;  %p870_p4 = scmp.ne.s32.totalorder %s858_s17, 0 }
  0x59   : > { %584 = dma.done.wait (%p870_p4), [#allocation6], 256  }
  0x5a   : > { %586 = vsyncadd (%p870_p4), [#allocation6], 4294967040  ;;  %v619_v0 = vmov 0.0   ;;  %vm620_vm0 = vmmov 0   ;;  %v467_v1 = vld [vmem:[#allocation5] sm:$0xff]   ;;  %v468_v2 = vld [vmem:[#allocation5 + $0x8] sm:$0xff]  }
  0x5b   : > { %382 = vmatprep.subr.bf16.mxu0 %v619_v0  ;;  %386 = vmatprep.mubr.msk.bf16.mxu0 %vm620_vm0, %v619_v0  ;;  %v192_v3 = vld [vmem:[%s166_s16] sm:$0xf]  ;;  %vm209_vm1 = vcmask 261120   ;;  %s376_s19 = sshll.u32 %s605_s12, 6  ;;  %s190_s21 = scalar_lea.vmem [#allocation7], %s369_s8  ;;  %vm254_vm2 = vcmask 519168  }
  0x5c   : > { %383 = vmatpush3.bf16.msra.mxu0 %v467_v1  ;;  %s271_s4 = sshll.u32 %s190_s21, 4  ;;  %s802_s6 = scalar_lea.hbm %s853_s2, %s376_s19  ;;  %s804_s4 = int_to_ptr.vmem [resolvable:$true] %s271_s4 }
  0x5d   : > { %384 = vmatprep.subr.bf16.mxu0 %v619_v0  ;;  %s257_s12 = scalar_lea.sflag [#allocation4], %s786_s18  ;;  %s527_s7 = scalar_lea.vmem %s804_s4, 64 }
  0x5e   : > { %p528_p13 = scmp.ne.s32.totalorder %s804_s4, %s527_s7  ;;  %s621_s24 = smov [#allocation7]  }
  0x5f   : > { %s531_s22 = sshll.u32 %s621_s24, 4  ;;  %s532_s22 = int_to_ptr.vmem [resolvable:$false] %s531_s22 }
  0x60   : > { %385 = vmatpush3.bf16.msra.mxu0 %v468_v2  ;;  %p529_p6 = pnand %p528_p13, %p733_p10  ;;  %s533_s27 = scalar_lea.vmem %s532_s22, 128 }
  0x61   : > { %p534_p12 = scmp.lt.s32.totalorder %s804_s4, %s532_s22  ;;  %p535_p11 = scmp.lt.s32.totalorder %s533_s27, %s527_s7 }
  0x62   : > { %p530_p8 = pneg %p529_p6 }
  0x63   : > { %387 = vmatmul.mubr.msk.bf16.vlgmr.msra.gmra.mrb[0].mxu0 %vm209_vm1, %v192_v3  ;;  %p536_p0 = por %p535_p11, %p534_p12 }
  0x65   : > { %p537_p5 = pnand %p536_p0, %p530_p8 }
 0x136   : > { %v247_v4 = vpop.f32.mrb[0].mxu0 }
 0x137   : > { %v253_v5 = vpack.c.bf16 %v247_v4, %v247_v4  ;;  %v388_v6 = vpop.f32.mrb[1].mxu0 }
 0x138   : > { %v250_v7 = vpop.f32.mrb[2].mxu0 }
 0x139   : > { %v389_v8 = vpop.f32.mrb[3].mxu0  ;;  %255 = vst.msk [vmem:[%s190_s21] sm:$0xf] %vm254_vm2, %v253_v5 }
 0x13a   : > { %540 = shalt.err (!%p537_p5)
}
 0x13b   : > { %s541_s23 = scalar_lea.hbm %s802_s6, 64  ;;  %s545_s3 = scalar_lea.hbm %s853_s2, 128 }
 0x13c   : > { %p542_p9 = scmp.ne.s32.totalorder %s802_s6, %s541_s23  ;;  %p546_p7 = scmp.lt.u32.totalorder %s802_s6, %s853_s2 }
 0x13d   : > { %p547_p3 = scmp.lt.u32.totalorder %s545_s3, %s541_s23  ;;  %p549_p13 = scmp.lt.u32.totalorder %s541_s23, %s802_s6 }
 0x13e   : > { %p543_p1 = pnand %p542_p9, %p733_p10 }
 0x13f   : > { %p548_p4 = por %p547_p3, %p546_p7 }
 0x140   : > { %p544_p2 = pneg %p543_p1 }
 0x141   : > { %p550_p6 = por %p549_p13, %p548_p4 }
 0x143   : > { %p551_p8 = pnand %p550_p6, %p544_p2 }
 0x145   : > { %554 = shalt.err (!%p551_p8)
}
 0x146   : > { %396 = dma.vmem_to_hbm [thread:$0]  (%p733_p10), %s804_s4, 64, %s802_s6, %s257_s12  }
 0x147 PF: > { %s283_s15 = sand.u32 1, %s593_s9   ;;  %p871_p12 = scmp.ne.s32.totalorder %s861_s20, 0 }
 0x148   : > { %p872_p11 = scmp.ge.s32.totalorder %s613_s14, 2  ;;  %s284_s16 = scalar_lea.sflag [#allocation4], %s283_s15 }
 0x14a   : > { %p407_p0 = pnand %p872_p11, %p871_p12 }
 0x14c   : > { %588 = dma.done.wait (!%p407_p0), %s284_s16, 64  }
 0x14d   : > { %590 = vsyncadd (!%p407_p0), %s284_s16, 4294967232  ;;  %s19_s14 = sadd.s32 1, %s613_s14   ;;  %s873_s9 = smov %s597_s10 }
 0x14e   : > { %p16_p5 = scmp.ge.s32.totalorder %s19_s14, 4   ;;  %s874_s10 = smov %s601_s11 }
 0x14f   : > { %s875_s11 = smov %s742_s28  ;;  %s876_s12 = smov %s609_s13 }
 0x150   : > { %s877_s13 = smov %s879_s25  ;;  %18 = sbr.rel (!%p16_p5) target bundleno = 7 (0x7), region = 77 }
 0x157   :  { %289 = vsyncpa [#allocation3], 1 }
 0x158   :  { %291 = vsyncpa [#allocation3 + $0x1], 1 }
 0x159   :  { %292 = vsyncpa [#allocation6], 1 }
 0x15a   :  { %293 = vsyncpa [#allocation4], 1 }
 0x15b   :  { %295 = vsyncpa [#allocation4 + $0x1], 1 }

</bundles_post_ra>
